<compile_context>
chip_gen: v6e
topology: v6e:2x2x1
jax: 0.10.0
libtpu: 0.0.40
codegen_flags: <defaults>
</compile_context>

<pallas_src>
import math

import jax
import jax.numpy as jnp
from jax.experimental import pallas as pl
from jax.experimental.pallas import tpu as pltpu

IN_F = 4          # CartPole state dim
HID = 40          # hidden units
OUT_F = 2         # Q-values
HID_PAD = 128     # hidden padded to one full lane-width (stays in vregs)
IN_PAD = 8        # W1 rows padded to one sublane group
OUT_PAD = 8       # output padded to 8 lanes only (block last dim == full dim)


def _net2_kernel(x_ref, w1_ref, b1_ref, w2_ref, b2_ref, o_ref):
    # x:  (tb, 4)       f32
    # w1: (8, 128)      f32  (rows >= 4 and cols >= 40 are zero)
    # b1: (1, 128)      f32  (cols >= 40 are zero)
    # w2: (128, 8)      f32  (rows >= 40 and cols >= 2 are zero)
    # b2: (1, 8)        f32  (cols >= 2 are zero)
    # o:  (tb, 8)       f32  (only cols < 2 are meaningful)
    tb = x_ref.shape[0]
    k_in = x_ref.shape[1]

    x = x_ref[...]
    w1 = w1_ref[...]

    # Layer 1: K=4 -> unrolled VPU broadcast-FMAs, bias pre-broadcast once.
    h = jnp.broadcast_to(b1_ref[...], (tb, HID_PAD))
    for k in range(k_in):                       # statically unrolled (4x)
        h = h + x[:, k:k + 1] * w1[k:k + 1, :]
    h = jnp.maximum(h, 0.0)                     # ReLU; padded lanes stay 0

    # Layer 2: (tb,128)@(128,8) MXU matmul, fused bias add, narrow store.
    y = jnp.dot(h, w2_ref[...], preferred_element_type=jnp.float32) + b2_ref[...]
    o_ref[...] = y.astype(o_ref.dtype)


def prepare_params(w1, b1, w2, b2):
    """One-time padding of Net2 parameters into tile-aligned operands.

    w1: (4, 40), b1: (1, 40) or (40,), w2: (40, 2), b2: (1, 2) or (2,)
    """
    w1p = jnp.zeros((IN_PAD, HID_PAD), jnp.float32).at[:IN_F, :HID].set(
        jnp.asarray(w1, jnp.float32))
    b1p = jnp.zeros((1, HID_PAD), jnp.float32).at[:, :HID].set(
        jnp.asarray(b1, jnp.float32).reshape(1, HID))
    w2p = jnp.zeros((HID_PAD, OUT_PAD), jnp.float32).at[:HID, :OUT_F].set(
        jnp.asarray(w2, jnp.float32))
    b2p = jnp.zeros((1, OUT_PAD), jnp.float32).at[:, :OUT_F].set(
        jnp.asarray(b2, jnp.float32).reshape(1, OUT_F))
    return w1p, b1p, w2p, b2p


def _choose_tiling(B, tile_b):
    """Pick (tb, Bp): tb multiple of 8, >=2 (even) tiles when possible."""
    Bp8 = ((max(B, 1) + 7) // 8) * 8
    if Bp8 <= 8:
        return 8, 8
    n = max(2, -(-Bp8 // tile_b))      # at least 2 tiles (v7x has 2 TCs)
    n += n % 2                         # even tile count -> balanced split
    tb = max(8, (-(-Bp8 // n) + 7) // 8 * 8)
    Bp = -(-B // tb) * tb
    return tb, Bp


def net2_forward(x, padded_params, *, tile_b=1024):
    """Pallas forward pass for Net2.

    x: (B, 4) float32; padded_params from prepare_params(). Returns (B, 2).
    """
    w1p, b1p, w2p, b2p = padded_params
    B = x.shape[0]

    tb, Bp = _choose_tiling(B, tile_b)
    xp = x if Bp == B else jnp.zeros((Bp, IN_F), x.dtype).at[:B].set(x)

    grid = (Bp // tb,)
    out_padded = pl.pallas_call(
        _net2_kernel,
        out_shape=jax.ShapeDtypeStruct((Bp, OUT_PAD), jnp.float32),
        grid=grid,
        in_specs=[
            pl.BlockSpec((tb, IN_F), lambda i: (i, 0)),        # activations: tiled
            pl.BlockSpec((IN_PAD, HID_PAD), lambda i: (0, 0)),  # weights: resident
            pl.BlockSpec((1, HID_PAD), lambda i: (0, 0)),
            pl.BlockSpec((HID_PAD, OUT_PAD), lambda i: (0, 0)),
            pl.BlockSpec((1, OUT_PAD), lambda i: (0, 0)),
        ],
        out_specs=pl.BlockSpec((tb, OUT_PAD), lambda i: (i, 0)),
        compiler_params=pltpu.CompilerParams(
            dimension_semantics=("parallel",)),                # both TCs on v7x
    )(xp, w1p, b1p, w2p, b2p)

    # Padded rows (>= B) hold garbage (relu(b1)@w2+b2); never expose them.
    return out_padded[:B, :OUT_F]


net2_forward_jit = jax.jit(net2_forward, static_argnames=("tile_b",))


def init_params(key):
    """Deterministic init matching PyTorch nn.Linear default U(-1/sqrt(fan_in), +)."""
    k1, k2, k3, k4 = jax.random.split(key, 4)
    bound1 = 1.0 / math.sqrt(4.0)
    bound2 = 1.0 / math.sqrt(40.0)
    w1 = jax.random.uniform(k1, (IN_F, HID), jnp.float32, -bound1, bound1)
    b1 = jax.random.uniform(k2, (1, HID), jnp.float32, -bound1, bound1)
    w2 = jax.random.uniform(k3, (HID, OUT_F), jnp.float32, -bound2, bound2)
    b2 = jax.random.uniform(k4, (1, OUT_F), jnp.float32, -bound2, bound2)
    return w1, b1, w2, b2


def _ref_forward(x, w1, b1, w2, b2):
    return jnp.maximum(x @ w1 + b1, 0.0) @ w2 + b2


if __name__ == "__main__":
    key = jax.random.PRNGKey(0)
    k_x, k_x2, k_p = jax.random.split(key, 3)
    w1, b1, w2, b2 = init_params(k_p)
    padded = prepare_params(w1, b1, w2, b2)   # one-time parameter prep

    # Small batch (single tile, grid=(1,)).
    batch = 2
    x = jax.random.normal(k_x, (batch, IN_F), jnp.float32)
    out = jax.block_until_ready(net2_forward_jit(x, padded))
    ref = _ref_forward(x, w1, b1, w2, b2)
    assert out.shape == (batch, OUT_F)
    assert jnp.allclose(out, ref, atol=1e-5, rtol=1e-5)

    # Non-multiple batch exercising the tiled / padded multi-tile (2-tile) path.
    batch2 = 600
    x2 = jax.random.normal(k_x2, (batch2, IN_F), jnp.float32)
    out2 = jax.block_until_ready(net2_forward_jit(x2, padded))
    ref2 = _ref_forward(x2, w1, b1, w2, b2)
    assert out2.shape == (batch2, OUT_F)
    assert jnp.allclose(out2, ref2, atol=1e-5, rtol=1e-5)

    print("KERNEL_OK")
</pallas_src>

<mosaic_0001>
module attributes {stable_mosaic.version = 11 : i64} {
  func.func @_net2_kernel(%arg0: i32, %arg1: memref<8x4xf32, #tpu.memory_space<vmem>>, %arg2: memref<8x128xf32, #tpu.memory_space<vmem>>, %arg3: memref<1x128xf32, #tpu.memory_space<vmem>>, %arg4: memref<128x8xf32, #tpu.memory_space<vmem>>, %arg5: memref<1x8xf32, #tpu.memory_space<vmem>>, %arg6: memref<8x8xf32, #tpu.memory_space<vmem>>) attributes {dimension_semantics = [#tpu.dimension_semantics<parallel>], iteration_bounds = array<i64: 1>, scalar_prefetch = 0 : i64, scratch_operands = 0 : i64, tpu.core_type = #tpu.core_type<tc>, window_params = [{transform_indices = @transform_0, window_bounds = array<i64: 8, 4>}, {pipeline_mode = #tpu.pipeline_mode<synchronous>, transform_indices = @transform_1, window_bounds = array<i64: 8, 128>}, {pipeline_mode = #tpu.pipeline_mode<synchronous>, transform_indices = @transform_2, window_bounds = array<i64: 1, 128>}, {pipeline_mode = #tpu.pipeline_mode<synchronous>, transform_indices = @transform_3, window_bounds = array<i64: 128, 8>}, {pipeline_mode = #tpu.pipeline_mode<synchronous>, transform_indices = @transform_4, window_bounds = array<i64: 1, 8>}, {transform_indices = @transform_5, window_bounds = array<i64: 8, 8>}]} {
    %c0 = arith.constant 0 : index
    %c0_0 = arith.constant 0 : index
    %0 = vector.load %arg1[%c0, %c0_0] : memref<8x4xf32, #tpu.memory_space<vmem>>, vector<8x4xf32>
    %c0_1 = arith.constant 0 : index
    %c0_2 = arith.constant 0 : index
    %1 = vector.load %arg2[%c0_1, %c0_2] : memref<8x128xf32, #tpu.memory_space<vmem>>, vector<8x128xf32>
    %c0_3 = arith.constant 0 : index
    %c0_4 = arith.constant 0 : index
    %2 = vector.load %arg3[%c0_3, %c0_4] : memref<1x128xf32, #tpu.memory_space<vmem>>, vector<1x128xf32>
    %3 = vector.shape_cast %2 : vector<1x128xf32> to vector<1x128xf32>
    %4 = vector.broadcast %3 : vector<1x128xf32> to vector<8x128xf32>
    %5 = vector.extract_strided_slice %0 {offsets = [0, 0], sizes = [8, 1], strides = [1, 1]} : vector<8x4xf32> to vector<8x1xf32>
    %6 = vector.extract_strided_slice %1 {offsets = [0, 0], sizes = [1, 128], strides = [1, 1]} : vector<8x128xf32> to vector<1x128xf32>
    %7 = vector.broadcast %5 : vector<8x1xf32> to vector<8x128xf32>
    %8 = vector.broadcast %6 : vector<1x128xf32> to vector<8x128xf32>
    %9 = arith.mulf %7, %8 : vector<8x128xf32>
    %10 = arith.addf %4, %9 : vector<8x128xf32>
    %11 = vector.extract_strided_slice %0 {offsets = [0, 1], sizes = [8, 1], strides = [1, 1]} : vector<8x4xf32> to vector<8x1xf32>
    %12 = vector.extract_strided_slice %1 {offsets = [1, 0], sizes = [1, 128], strides = [1, 1]} : vector<8x128xf32> to vector<1x128xf32>
    %13 = vector.broadcast %11 : vector<8x1xf32> to vector<8x128xf32>
    %14 = vector.broadcast %12 : vector<1x128xf32> to vector<8x128xf32>
    %15 = arith.mulf %13, %14 : vector<8x128xf32>
    %16 = arith.addf %10, %15 : vector<8x128xf32>
    %17 = vector.extract_strided_slice %0 {offsets = [0, 2], sizes = [8, 1], strides = [1, 1]} : vector<8x4xf32> to vector<8x1xf32>
    %18 = vector.extract_strided_slice %1 {offsets = [2, 0], sizes = [1, 128], strides = [1, 1]} : vector<8x128xf32> to vector<1x128xf32>
    %19 = vector.broadcast %17 : vector<8x1xf32> to vector<8x128xf32>
    %20 = vector.broadcast %18 : vector<1x128xf32> to vector<8x128xf32>
    %21 = arith.mulf %19, %20 : vector<8x128xf32>
    %22 = arith.addf %16, %21 : vector<8x128xf32>
    %23 = vector.extract_strided_slice %0 {offsets = [0, 3], sizes = [8, 1], strides = [1, 1]} : vector<8x4xf32> to vector<8x1xf32>
    %24 = vector.extract_strided_slice %1 {offsets = [3, 0], sizes = [1, 128], strides = [1, 1]} : vector<8x128xf32> to vector<1x128xf32>
    %25 = vector.broadcast %23 : vector<8x1xf32> to vector<8x128xf32>
    %26 = vector.broadcast %24 : vector<1x128xf32> to vector<8x128xf32>
    %27 = arith.mulf %25, %26 : vector<8x128xf32>
    %28 = arith.addf %22, %27 : vector<8x128xf32>
    %cst = arith.constant 0.000000e+00 : f32
    %29 = vector.broadcast %cst : f32 to vector<8x128xf32>
    %30 = arith.maximumf %28, %29 : vector<8x128xf32>
    %c0_5 = arith.constant 0 : index
    %c0_6 = arith.constant 0 : index
    %31 = vector.load %arg4[%c0_5, %c0_6] : memref<128x8xf32, #tpu.memory_space<vmem>>, vector<128x8xf32>
    %cst_7 = arith.constant dense<0.000000e+00> : vector<8x8xf32>
    %32 = tpu.matmul %30, %31, %cst_7 {dimension_numbers = #tpu.dot_dimension_numbers<[1], [0], [0], [1], [0, 0, 1, 1], [], []>} : vector<8x128xf32>, vector<128x8xf32>, vector<8x8xf32> -> vector<8x8xf32>
    %c0_8 = arith.constant 0 : index
    %c0_9 = arith.constant 0 : index
    %33 = vector.load %arg5[%c0_8, %c0_9] : memref<1x8xf32, #tpu.memory_space<vmem>>, vector<1x8xf32>
    %34 = vector.broadcast %33 : vector<1x8xf32> to vector<8x8xf32>
    %35 = arith.addf %32, %34 : vector<8x8xf32>
    %c0_10 = arith.constant 0 : index
    %c0_11 = arith.constant 0 : index
    %36 = vector.load %arg6[%c0_10, %c0_11] : memref<8x8xf32, #tpu.memory_space<vmem>>, vector<8x8xf32>
    tpu.vector_store %arg6[%c0_10, %c0_11], %35 {strides = array<i32>} : memref<8x8xf32, #tpu.memory_space<vmem>>, vector<8x8xf32>,
    return
  }
  func.func @transform_0(%arg0: i32) -> (i32, i32) {
    %c0_i32 = arith.constant 0 : i32
    %c0_i32_0 = arith.constant 0 : i32
    return %arg0, %c0_i32 : i32, i32
  }
  func.func @transform_1(%arg0: i32) -> (i32, i32) {
    %c0_i32 = arith.constant 0 : i32
    %c0_i32_0 = arith.constant 0 : i32
    %c0_i32_1 = arith.constant 0 : i32
    return %c0_i32, %c0_i32_0 : i32, i32
  }
  func.func @transform_2(%arg0: i32) -> (i32, i32) {
    %c0_i32 = arith.constant 0 : i32
    %c0_i32_0 = arith.constant 0 : i32
    %c0_i32_1 = arith.constant 0 : i32
    return %c0_i32, %c0_i32_0 : i32, i32
  }
  func.func @transform_3(%arg0: i32) -> (i32, i32) {
    %c0_i32 = arith.constant 0 : i32
    %c0_i32_0 = arith.constant 0 : i32
    %c0_i32_1 = arith.constant 0 : i32
    return %c0_i32, %c0_i32_0 : i32, i32
  }
  func.func @transform_4(%arg0: i32) -> (i32, i32) {
    %c0_i32 = arith.constant 0 : i32
    %c0_i32_0 = arith.constant 0 : i32
    %c0_i32_1 = arith.constant 0 : i32
    return %c0_i32, %c0_i32_0 : i32, i32
  }
  func.func @transform_5(%arg0: i32) -> (i32, i32) {
    %c0_i32 = arith.constant 0 : i32
    %c0_i32_0 = arith.constant 0 : i32
    return %arg0, %c0_i32 : i32, i32
  }
}

</mosaic_0001>

<bundles_post_ra>
// kernel: net2_forward.1
= control target key start
LH: loop header
LB: loop body
LE: loop exit
PB: predicated region body
PF: predicated region fallthrough
CT: control target
= control target key end

     0   :  { %v235_v0 = vmov 0   ;;  %v236_v2 = vmov 2   ;;  %v237_v4 = vmov 0.0   ;;  %v238_v6 = vmov 1   ;;  %s334_s0 = inlined_call_operand.vmem [shape: f32[8,4], index: 0, kind: input, shape index: {}]   ;;  %s335_s3 = inlined_call_operand.vmem [shape: f32[128,8], index: 3, kind: input, shape index: {}]   ;;  %s336_s1 = inlined_call_operand.vmem [shape: f32[8,128], index: 1, kind: input, shape index: {}]   ;;  %s337_s2 = inlined_call_operand.vmem [shape: f32[1,128], index: 2, kind: input, shape index: {}]   ;;  %s338_s4 = inlined_call_operand.vmem [shape: f32[1,8], index: 4, kind: input, shape index: {}]   ;;  %s339_s5 = inlined_call_operand.vmem [shape: f32[8,8], index: 5, kind: output, shape index: {}]  }
   0x1   :  { %230 = vset.pattern.permute.xlu0 %v235_v0  ;;  %v20_v1 = vld [vmem:[%s334_s0] sm:$0xff]  ;;  %232 = vset.pattern.permute.xlu1 %v236_v2  ;;  %v86_v3 = vld [vmem:[%s335_s3 + $0x78] sm:$0xff]  ;;  %v85_v5 = vld [vmem:[%s335_s3 + $0x70] sm:$0xff]  ;;  %v239_v7 = vmov 3   ;;  %vm240_vm0 = vmmov 0   ;;  %v34_v22 = vlaneseq  ;;  %vm164_vm1 = vcmask 64512  }
   0x2   :  { %31 = vperm.xlu0 %230, %v20_v1   ;;  %51 = vperm.xlu1 %232, %v20_v1   ;;  %v84_v8 = vld [vmem:[%s335_s3 + $0x68] sm:$0xff]  ;;  %v83_v9 = vld [vmem:[%s335_s3 + $0x60] sm:$0xff]  ;;  %v82_v10 = vld [vmem:[%s335_s3 + $0x58] sm:$0xff] }
   0x3   :  { %189 = vmatprep.subr.mxu0 %v237_v4  ;;  %221 = vmatprep.mubr.msk.f32.mxu0 %vm240_vm0, %v237_v4  ;;  %v81_v11 = vld [vmem:[%s335_s3 + $0x50] sm:$0xff]  ;;  %v80_v12 = vld [vmem:[%s335_s3 + $0x48] sm:$0xff]  ;;  %v79_v13 = vld [vmem:[%s335_s3 + $0x40] sm:$0xff]  ;;  %v35_v23 = vshrl.u32 %v34_v22, 7 }
   0x4   :  { %190 = vmatpush3.msra.mxu0 %v86_v3  ;;  %v78_v14 = vld [vmem:[%s335_s3 + $0x38] sm:$0xff]  ;;  %v77_v15 = vld [vmem:[%s335_s3 + $0x30] sm:$0xff]  ;;  %v76_v16 = vld [vmem:[%s335_s3 + $0x28] sm:$0xff] }
   0x5   :  { %191 = vmatprep.subr.mxu0 %v237_v4  ;;  %v75_v17 = vld [vmem:[%s335_s3 + $0x20] sm:$0xff]  ;;  %v74_v18 = vld [vmem:[%s335_s3 + $0x18] sm:$0xff]  ;;  %v73_v19 = vld [vmem:[%s335_s3 + $0x10] sm:$0xff]  ;;  %v36_v24 = vsub.s32 0, %v35_v23  ;;  %v46_v27 = vsub.s32 1, %v35_v23  ;;  %v56_v29 = vsub.s32 2, %v35_v23 }
   0x6   :  { %231 = vset.pattern.permute.xlu0 %v238_v6  ;;  %233 = vset.pattern.permute.xlu1 %v239_v7  ;;  %v72_v20 = vld [vmem:[%s335_s3 + $0x8] sm:$0xff]  ;;  %v71_v21 = vld [vmem:[%s335_s3] sm:$0xff]  ;;  %v66_v31 = vsub.s32 3, %v35_v23 }
   0x7   :  { %41 = vperm.xlu0 %231, %v20_v1   ;;  %61 = vperm.xlu1 %233, %v20_v1   ;;  %v21_v25 = vld [vmem:[%s336_s1] sm:$0xff] }
   0x8   :  { %192 = vmatpush3.msra.mxu0 %v85_v5  ;;  %v37_v26 = vrot.slane %v21_v25, %v36_v24  ;;  %v47_v33 = vrot.slane %v21_v25, %v46_v27  ;;  %v170_v34 = vld [vmem:[%s337_s2] ss:$0 sm:$0xff]  ;;  %v57_v35 = vrot.slane %v21_v25, %v56_v29  ;;  %v67_v36 = vrot.slane %v21_v25, %v66_v31 }
   0x9   :  { %193 = vmatprep.subr.mxu0 %v237_v4  ;;  %v171_v47 = vld [vmem:[%s338_s4] ss:$0 sm:$0xff] }
   0xa   :  { %194 = vmatpush3.msra.mxu0 %v84_v8 }
   0xb   :  { %195 = vmatprep.subr.mxu0 %v237_v4  ;;  %234 = vset.pattern.permute.xlu0 %v239_v7 }
   0xc   :  { %196 = vmatpush3.msra.mxu0 %v83_v9 }
   0xd   :  { %197 = vmatprep.subr.mxu0 %v237_v4 }
   0xe   :  { %198 = vmatpush3.msra.mxu0 %v82_v10 }
   0xf   :  { %199 = vmatprep.subr.mxu0 %v237_v4 }
  0x10   :  { %200 = vmatpush3.msra.mxu0 %v81_v11 }
  0x11   :  { %201 = vmatprep.subr.mxu0 %v237_v4 }
  0x12   :  { %202 = vmatpush3.msra.mxu0 %v80_v12 }
  0x13   :  { %203 = vmatprep.subr.mxu0 %v237_v4 }
  0x14   :  { %204 = vmatpush3.msra.mxu0 %v79_v13 }
  0x15   :  { %205 = vmatprep.subr.mxu0 %v237_v4 }
  0x16   :  { %206 = vmatpush3.msra.mxu0 %v78_v14 }
  0x17   :  { %207 = vmatprep.subr.mxu0 %v237_v4 }
  0x18   :  { %208 = vmatpush3.msra.mxu0 %v77_v15 }
  0x19   :  { %209 = vmatprep.subr.mxu0 %v237_v4 }
  0x1a   :  { %210 = vmatpush3.msra.mxu0 %v76_v16 }
  0x1b   :  { %211 = vmatprep.subr.mxu0 %v237_v4 }
  0x1c   :  { %212 = vmatpush3.msra.mxu0 %v75_v17 }
  0x1d   :  { %213 = vmatprep.subr.mxu0 %v237_v4 }
  0x1e   :  { %214 = vmatpush3.msra.mxu0 %v74_v18 }
  0x1f   :  { %215 = vmatprep.subr.mxu0 %v237_v4 }
  0x20   :  { %216 = vmatpush3.msra.mxu0 %v73_v19 }
  0x21   :  { %217 = vmatprep.subr.mxu0 %v237_v4 }
  0x22   :  { %218 = vmatpush3.msra.mxu0 %v72_v20 }
  0x23   :  { %219 = vmatprep.subr.mxu0 %v237_v4 }
  0x24   :  { %220 = vmatpush3.msra.mxu0 %v71_v21 }
  0x7d   :  { %v32_v28 = vpop.permute.xlu0 %31  ;;  %v52_v30 = vpop.permute.xlu1 %51 }
  0x7e   :  { %v38_v32 = vmul.f32 %v37_v26, %v32_v28  ;;  %v58_v41 = vmul.f32 %v57_v35, %v52_v30 }
  0x80   :  { %v39_v39 = vadd.f32 %v170_v34, %v38_v32 }
  0x82   :  { %v42_v37 = vpop.permute.xlu0 %41  ;;  %v62_v38 = vpop.permute.xlu1 %61 }
  0x83   :  { %v48_v40 = vmul.f32 %v47_v33, %v42_v37  ;;  %v68_v43 = vmul.f32 %v67_v36, %v62_v38 }
  0x85   :  { %v49_v42 = vadd.f32 %v48_v40, %v39_v39 }
  0x87   :  { %v59_v44 = vadd.f32 %v58_v41, %v49_v42 }
  0x89   :  { %v69_v45 = vadd.f32 %v68_v43, %v59_v44 }
  0x8b   :  { %v70_v46 = vmax.f32 %v69_v45, 0.0 }
  0x8d   :  { %222 = vmatmul.mubr.f32.vlgmr.msra.gmra.mxu0 %v70_v46 }
 0x14d   :  { %v160_v48 = vpop.f32.mrf.mxu0 }
 0x14e   :  { %v161_v49 = vadd.f32 %v171_v47, %v160_v48 }
 0x14f   :  { %v223_v50 = vpop.f32.mrf.mxu0 }
 0x150   :  { %165 = vst.msk [vmem:[%s339_s5] sm:$0xff] %vm164_vm1, %v161_v49 }

</bundles_post_ra>
